<compile_context>
chip_gen: v7x
topology: tpu7x:2x2x1
jax: 0.10.0
libtpu: 0.0.40
codegen_flags: <defaults>
</compile_context>

<pallas_src>
import functools

import jax
import jax.numpy as jnp
from jax import lax
from jax.experimental import pallas as pl
from jax.experimental.pallas import tpu as pltpu


def _round_up(x, m):
    return ((x + m - 1) // m) * m


def _pick_tiles(two_n, dp):
    """Return (tq, tk, two_np): row tile, column tile, padded row count."""
    if two_n <= 256:
        # Tiny problems: a single block covers everything (16-row alignment
        # for the bf16 sublane packing).
        t = _round_up(two_n, 16)
        return t, t, t

    # Row tile: minimize padding waste among MXU-friendly candidates while
    # keeping >= 2 row blocks (v7x has two TensorCores on the parallel axis).
    cands = [c for c in (512, 256, 128) if _round_up(two_n, c) >= 2 * c] or [128]
    tq = min(cands, key=lambda c: (_round_up(two_n, c) - two_n, -c))
    two_np = _round_up(two_n, tq)

    # Column tile: fattest multiple of tq dividing two_np under VMEM caps
    # (fewer reduction steps amortizes per-grid-step overhead).
    tk = tq
    m = two_np // tq
    for f in range(m, 0, -1):
        cand = tq * f
        if (m % f == 0
                and cand <= 2048
                and tq * cand * 4 <= (8 << 20)        # (tq, tk) f32 tile
                and 2 * cand * dp * 2 <= (8 << 20)):  # double-buffered zk blk
            tk = cand
            break
    return tq, tk, two_np


def _normalize_kernel(z_ref, zn_ref, *, eps, scale):
    """Row-normalize a (tile, Dp) block and fold sqrt(1/T) into the rows."""
    z = z_ref[...].astype(jnp.float32)
    ssq = jnp.sum(z * z, axis=-1, keepdims=True)
    inv = lax.rsqrt(jnp.maximum(ssq, eps * eps)) * scale
    zn_ref[...] = (z * inv).astype(zn_ref.dtype)


def _simclr_den_kernel(zq_ref, zk_ref, den_ref, *, shift, two_n, tq, tk,
                       has_pad):
    qi = pl.program_id(0)
    kj = pl.program_id(1)

    @pl.when(kj == 0)
    def _():
        den_ref[...] = jnp.zeros_like(den_ref)

    # (tq, tk) similarity tile: zn already carries sqrt(1/T), so the single
    # MXU matmul (contract dim 1 of both operands, f32 accumulate) directly
    # yields sim / T.  No transposes, no per-element temperature multiply.
    s = lax.dot_general(
        zq_ref[...], zk_ref[...],
        dimension_numbers=(((1,), (1,)), ((), ())),
        preferred_element_type=jnp.float32,
    )
    e = jnp.exp(s - shift)  # exponents <= 0: cosine similarity bounded by 1

    # Only the tile containing the diagonal segment of this row block (and,
    # if the batch was padded, the last column tile) needs any masking.
    # tq divides tk, so that diagonal segment lives in exactly one col block.
    is_diag = (qi * tq) // tk == kj
    if has_pad:
        need_mask = jnp.logical_or(is_diag, kj == pl.num_programs(1) - 1)
    else:
        need_mask = is_diag

    @pl.when(need_mask)
    def _():
        row_g = qi * tq + lax.broadcasted_iota(jnp.int32, (tq, tk), 0)
        col_g = kj * tk + lax.broadcasted_iota(jnp.int32, (tq, tk), 1)
        keep = row_g != col_g                       # drop the diagonal
        if has_pad:
            keep = jnp.logical_and(keep, col_g < two_n)   # drop pad columns
        den_ref[...] += jnp.sum(jnp.where(keep, e, 0.0), axis=1, keepdims=True)

    @pl.when(jnp.logical_not(need_mask))
    def _():
        den_ref[...] += jnp.sum(e, axis=1, keepdims=True)


def simclr_loss(z_i, z_j, temperature=0.5, eps=1e-8):
    n, d = z_i.shape
    two_n = 2 * n
    inv_t = 1.0 / float(temperature)

    dp = max(128, _round_up(d, 128))   # don't pad D past the MXU's needs
    tq, tk, two_np = _pick_tiles(two_n, dp)
    has_pad = two_np != two_n

    # --- O(N*D) JAX glue (cheap vs. the O(N^2 D) kernel hot path) -----------
    z = jnp.concatenate([z_i, z_j], axis=0).astype(jnp.float32)

    # Positive-pair logit pulled out of the O(N^2) loop: one f32 row-wise dot
    # per row against its partner row (row +/- N).
    nrm = jnp.sqrt(jnp.sum(z * z, axis=-1))
    z_pair = jnp.concatenate([z[n:], z[:n]], axis=0)
    nrm_pair = jnp.concatenate([nrm[n:], nrm[:n]], axis=0)
    pos = inv_t * jnp.sum(z * z_pair, axis=-1) / jnp.maximum(nrm * nrm_pair,
                                                             eps)

    zp = jnp.pad(z, ((0, two_np - two_n), (0, dp - d)))

    # --- Pass 1: row normalization + sqrt(1/T) fold (f32 math, bf16 out) ----
    zn = pl.pallas_call(
        functools.partial(_normalize_kernel, eps=float(eps),
                          scale=float(inv_t) ** 0.5),
        out_shape=jax.ShapeDtypeStruct((two_np, dp), jnp.bfloat16),
        grid=(two_np // tq,),
        in_specs=[pl.BlockSpec((tq, dp), lambda i: (i, 0))],
        out_specs=pl.BlockSpec((tq, dp), lambda i: (i, 0)),
        compiler_params=pltpu.CompilerParams(
            dimension_semantics=("parallel",)),
    )(zp)

    # Right-sized VMEM limit: double-buffered input blocks + (tq,1) output +
    # generous room for the (tq, tk) f32 intermediates, plus headroom.
    vmem_limit = int(min(
        32 * 1024 * 1024,
        2 * (tq * dp + tk * dp) * 2     # bf16 zq/zk blocks, double-buffered
        + 2 * tq * 4                    # den output block, double-buffered
        + 4 * tq * tk * 4               # s / e / select intermediates
        + 4 * 1024 * 1024))             # compiler scratch headroom

    # --- Pass 2: tiled similarity with online per-row denominator ----------
    kernel = functools.partial(
        _simclr_den_kernel, shift=float(inv_t), two_n=two_n,
        tq=tq, tk=tk, has_pad=has_pad)
    den = pl.pallas_call(
        kernel,
        out_shape=jax.ShapeDtypeStruct((two_np, 1), jnp.float32),
        grid=(two_np // tq, two_np // tk),        # reduction (col) axis last
        in_specs=[pl.BlockSpec((tq, dp), lambda qi, kj: (qi, 0)),   # row blk
                  pl.BlockSpec((tk, dp), lambda qi, kj: (kj, 0))],  # col blk
        out_specs=pl.BlockSpec((tq, 1), lambda qi, kj: (qi, 0)),
        compiler_params=pltpu.CompilerParams(
            dimension_semantics=("parallel", "arbitrary"),
            vmem_limit_bytes=vmem_limit),
    )(zn, zn)

    # --- Final O(2N) reduction (JAX glue) -----------------------------------
    # Keep the [:two_n] slice: padded rows are zero vectors whose den is
    # finite garbage and must never enter the mean.
    den = den[:two_n, 0]
    # -log(num/den) = log(den) - pos_logit; exp-shift constant restored here.
    return jnp.mean(jnp.log(den) + inv_t - pos)


def _simclr_loss_ref(z_i, z_j, temperature=0.5, eps=1e-8):
    # Pure-JAX reference mirroring the PyTorch module.
    n = z_i.shape[0]
    z = jnp.concatenate([z_i, z_j], axis=0).astype(jnp.float32)
    dot = z @ z.T
    norm = jnp.sqrt(jnp.sum(z * z, axis=-1, keepdims=True))
    sim = dot / jnp.maximum(norm * norm.T, eps) / temperature
    two_n = 2 * n
    labels = jnp.concatenate([jnp.arange(n), jnp.arange(n)])
    lab_mat = (labels[None, :] == labels[:, None]).astype(jnp.float32)
    diag = jnp.eye(two_n, dtype=bool)
    e = jnp.exp(sim)
    den = jnp.sum(jnp.where(diag, 0.0, e), axis=1)
    num = jnp.sum(jnp.where(diag, 0.0, lab_mat * e), axis=1)
    return jnp.mean(-jnp.log(num / den))


if __name__ == "__main__":
    key = jax.random.PRNGKey(0)
    k1, k2 = jax.random.split(key)
    N, D = 8, 64                      # small projection batch, hidden dim 64
    z_i = jax.random.normal(k1, (N, D), dtype=jnp.float32)
    z_j = jax.random.normal(k2, (N, D), dtype=jnp.float32)

    loss = simclr_loss(z_i, z_j, temperature=0.5)
    jax.block_until_ready(loss)

    ref = _simclr_loss_ref(z_i, z_j, temperature=0.5)
    # bf16 MXU operands (f32 accumulate) in the denominator -> slightly looser
    # tolerance; the positive logit is exact f32.
    assert jnp.allclose(loss, ref, rtol=2e-2, atol=2e-2), (loss, ref)
    print("KERNEL_OK")
</pallas_src>

<mosaic_0001>
module attributes {stable_mosaic.version = 11 : i64} {
  func.func @_normalize_kernel(%arg0: i32, %arg1: memref<16x128xf32, #tpu.memory_space<vmem>>, %arg2: memref<16x128xbf16, #tpu.memory_space<vmem>>) attributes {dimension_semantics = [#tpu.dimension_semantics<parallel>], iteration_bounds = array<i64: 1>, scalar_prefetch = 0 : i64, scratch_operands = 0 : i64, tpu.core_type = #tpu.core_type<tc>, window_params = [{transform_indices = @transform_0, window_bounds = array<i64: 16, 128>}, {transform_indices = @transform_1, window_bounds = array<i64: 16, 128>}]} {
    %c0 = arith.constant 0 : index
    %c0_0 = arith.constant 0 : index
    %0 = vector.load %arg1[%c0, %c0_0] : memref<16x128xf32, #tpu.memory_space<vmem>>, vector<16x128xf32>
    %1 = arith.mulf %0, %0 : vector<16x128xf32>
    %cst = arith.constant dense<0.000000e+00> : vector<16xf32>
    %2 = vector.multi_reduction <add>, %1, %cst [1] : vector<16x128xf32> to vector<16xf32>
    %3 = vector.shape_cast %2 : vector<16xf32> to vector<16x1xf32>
    %cst_1 = arith.constant 1.000000e-16 : f32
    %4 = vector.broadcast %cst_1 : f32 to vector<16x1xf32>
    %5 = arith.maximumf %3, %4 : vector<16x1xf32>
    %6 = math.rsqrt %5 : vector<16x1xf32>
    %cst_2 = arith.constant 1.41421354 : f32
    %7 = vector.broadcast %cst_2 : f32 to vector<16x1xf32>
    %8 = arith.mulf %6, %7 : vector<16x1xf32>
    %9 = vector.broadcast %8 : vector<16x1xf32> to vector<16x128xf32>
    %10 = arith.mulf %0, %9 : vector<16x128xf32>
    %11 = arith.truncf %10 : vector<16x128xf32> to vector<16x128xbf16>
    %c0_3 = arith.constant 0 : index
    %c0_4 = arith.constant 0 : index
    %12 = vector.load %arg2[%c0_3, %c0_4] : memref<16x128xbf16, #tpu.memory_space<vmem>>, vector<16x128xbf16>
    tpu.vector_store %arg2[%c0_3, %c0_4], %11 {strides = array<i32>} : memref<16x128xbf16, #tpu.memory_space<vmem>>, vector<16x128xbf16>,
    return
  }
  func.func @transform_0(%arg0: i32) -> (i32, i32) {
    %c0_i32 = arith.constant 0 : i32
    %c0_i32_0 = arith.constant 0 : i32
    return %arg0, %c0_i32 : i32, i32
  }
  func.func @transform_1(%arg0: i32) -> (i32, i32) {
    %c0_i32 = arith.constant 0 : i32
    %c0_i32_0 = arith.constant 0 : i32
    return %arg0, %c0_i32 : i32, i32
  }
}

</mosaic_0001>

<bundles_post_ra>
// kernel: tpu_custom_call.1
= control target key start
LH: loop header
LB: loop body
LE: loop exit
PB: predicated region body
PF: predicated region fallthrough
CT: control target
= control target key end

     0   :  { %6 = vsyncpa [#allocation3], 0  ;;  %s173_s0 = inlined_call_operand.hbm [shape: f32[16,128], index: 0, kind: input, shape index: {}]   ;;  %s174_s1 = inlined_call_operand.hbm [shape: bf16[16,128], index: 1, kind: output, shape index: {}]  }
   0x1   :  { %7 = vsyncpa [#allocation4], 0  ;;  %s133_s6 = smov [#allocation2]   ;;  %s85_s10 = scalar_lea.hbm %s173_s0, 256 }
   0x2   :  { %s13_s7 = sshll.u32 %s133_s6, 4  ;;  %p86_p0 = scmp.ne.s32.totalorder %s173_s0, %s85_s10  ;;  %s14_s7 = int_to_ptr.vmem [resolvable:$true] %s13_s7 }
   0x3   :  { %p89_p1 = scmp.lt.u32.totalorder %s85_s10, %s173_s0 }
   0x5   :  { %p91_p2 = pnand %p89_p1, %p86_p0 }
   0x7   :  { %94 = shalt.err (!%p91_p2)
}
   0x8   :  { %s95_s15 = scalar_lea.vmem %s14_s7, 256  ;;  %p100_p4 = scmp.lt.s32.totalorder %s14_s7, %s14_s7 }
   0x9   :  { %p96_p3 = scmp.ne.s32.totalorder %s14_s7, %s95_s15  ;;  %p101_p5 = scmp.lt.s32.totalorder %s95_s15, %s95_s15 }
   0xb   :  { %p102_p6 = por %p101_p5, %p100_p4 }
   0xd   :  { %p103_p7 = pnand %p102_p6, %p96_p3 }
   0xf   :  { %106 = shalt.err (!%p103_p7)
}
  0x10   :  { %s134_s16 = smov 128   ;;  %s135_s17 = smov 8  }
  0x11   :  { %19 = dma.hbm_to_vmem [thread:$0]  %s173_s0, 256, %s14_s7, [#allocation3], %s134_s16, %s134_s16, %s135_s17  }
  0x12   :  { %129 = dma.done.wait [#allocation3], 256  }
  0x13   :  { %130 = vsyncadd [#allocation3], 4294967040  ;;  %v23_v0 = vld [vmem:[#allocation2] sm:$0xff]  ;;  %v24_v1 = vld [vmem:[#allocation2 + $0x8] sm:$0xff]  ;;  %s136_s20 = smov [#allocation5]  }
  0x14   :  { %v25_v2 = vmul.f32 %v23_v0, %v23_v0  ;;  %v26_v3 = vmul.f32 %v24_v1, %v24_v1  ;;  %s54_s0 = sshll.u32 %s136_s20, 4  ;;  %s55_s0 = int_to_ptr.vmem [resolvable:$true] %s54_s0 }
  0x15   :  { %s107_s21 = scalar_lea.vmem %s55_s0, 128  ;;  %p112_p9 = scmp.lt.s32.totalorder %s55_s0, %s55_s0 }
  0x16   :  { %27 = vadd.xlane.f32.xlu0 %v25_v2  ;;  %p108_p8 = scmp.ne.s32.totalorder %s55_s0, %s107_s21  ;;  %p113_p10 = scmp.lt.s32.totalorder %s107_s21, %s107_s21 }
  0x18   :  { %p114_p11 = por %p113_p10, %p112_p9 }
  0x1a   :  { %29 = vadd.xlane.f32.xlu0 %v26_v3  ;;  %p115_p12 = pnand %p114_p11, %p108_p8 }
  0xa3   :  { %v28_v4 = vpop.xlane.xlu0 %27 }
  0xa4   :  { %v31_v5 = vmax.f32 %v28_v4, 1e-16 }
  0xa6   :  { %81 = vrsqrt.f32 %v31_v5 }
  0xa7   :  { %v30_v6 = vpop.xlane.xlu0 %29 }
  0xa8   :  { %v32_v7 = vmax.f32 %v30_v6, 1e-16 }
  0xaa   :  { %83 = vrsqrt.f32 %v32_v7 }
  0xb0   :  { %v82_v8 = vpop.eup %81 }
  0xb1   :  { %v35_v9 = vmul.f32 1.4142135, %v82_v8 }
  0xb3   :  { %v37_v12 = vmul.f32 %v35_v9, %v23_v0 }
  0xb4   :  { %v84_v10 = vpop.eup %83 }
  0xb5   :  { %v36_v11 = vmul.f32 1.4142135, %v84_v10 }
  0xb7   :  { %v38_v13 = vmul.f32 %v36_v11, %v24_v1 }
  0xb9   :  { %v73_v14 = vpack.c.bf16 %v38_v13, %v37_v12 }
  0xbb   :  { %74 = vst [vmem:[#allocation5] sm:$0xff] %v73_v14  }
  0xbc   :  { %118 = shalt.err (!%p115_p12)
}
  0xbd   :  { %s119_s24 = scalar_lea.hbm %s174_s1, 128 }
  0xbe   :  { %p120_p13 = scmp.ne.s32.totalorder %s174_s1, %s119_s24  ;;  %p123_p0 = scmp.lt.u32.totalorder %s119_s24, %s174_s1 }
  0xc0   :  { %p125_p1 = pnand %p123_p0, %p120_p13 }
  0xc2   :  { %128 = shalt.err (!%p125_p1)
}
  0xc3   :  { %s137_s29 = smov 64   ;;  %s138_s30 = smov 4  }
  0xc4   :  { %60 = dma.vmem_to_hbm [thread:$0]  %s55_s0, 128, %s174_s1, [#allocation4], %s137_s29, %s137_s29, %s138_s30  }
  0xc5   :  { %131 = dma.done.wait [#allocation4], 128  }
  0xc6   :  { %132 = vsyncadd [#allocation4], 4294967168 }
  0xc7   :  { %64 = vsyncpa [#allocation3], 1 }
  0xc8   :  { %65 = vsyncpa [#allocation4], 1 }

</bundles_post_ra>
